<compile_context>
chip_gen: v6e
topology: v6e:2x2x1
jax: 0.10.0
libtpu: 0.0.40
codegen_flags: <defaults>
</compile_context>

<pallas_src>
from functools import partial

import jax
import jax.numpy as jnp
from jax.experimental import pallas as pl
from jax.experimental.pallas import tpu as pltpu


def _attn_kernel(q_ref, k_ref, v_ref, wq_ref, wk_ref, wv_ref,
                 bq_ref, bk_ref, bv_ref, o_ref, *, keep_scale):
    Bt, S, Din = q_ref.shape
    H = wq_ref.shape[1]

    # Broadcast the tiny (Din,H) weights over the batch tile so the projections are
    # batched MXU matmuls (same 'b..,b..' pattern Mosaic lowers for flash-attention).
    wq_b = jnp.broadcast_to(wq_ref[...][None], (Bt, Din, H))
    wk_b = jnp.broadcast_to(wk_ref[...][None], (Bt, Din, H))
    wv_b = jnp.broadcast_to(wv_ref[...][None], (Bt, Din, H))

    # Projections. 1/scale_factor is already folded into wk/bk at init time.
    q = jnp.einsum('bsd,bdh->bsh', q_ref[...], wq_b,
                   preferred_element_type=jnp.float32) + bq_ref[...]
    k = jnp.einsum('bsd,bdh->bsh', k_ref[...], wk_b,
                   preferred_element_type=jnp.float32) + bk_ref[...]
    v = jnp.einsum('bsd,bdh->bsh', v_ref[...], wv_b,
                   preferred_element_type=jnp.float32) + bv_ref[...]

    # logits = q @ k^T  (scale pre-folded); numerically-stable softmax on last axis.
    logits = jnp.einsum('bqh,bkh->bqk', q, k, preferred_element_type=jnp.float32)
    m = jnp.max(logits, axis=-1, keepdims=True)
    e = jnp.exp(logits - m)
    denom = jnp.sum(e, axis=-1, keepdims=True)
    inv = pl.reciprocal(denom, approx=True)
    if keep_scale != 1.0:
        # Dropout rescale applied to the (Bt,S,1) reciprocal, not the (Bt,S,S) probs.
        # TODO(synk): Bernoulli masking for 0 < p < 1 (only the 1/(1-p) rescale here).
        inv = inv * keep_scale
    probs = e * inv

    o_ref[...] = jnp.einsum('bqk,bkh->bqh', probs, v,
                            preferred_element_type=jnp.float32).astype(o_ref.dtype)


def fuse_params(params, scale_factor):
    """Pre-transpose weights and fold 1/scale_factor into Wk/bk (one-time, at init)."""
    inv_scale = 1.0 / float(scale_factor)
    wq = params["wq"].T.astype(jnp.float32)                     # (Din, H)
    wk = (params["wk"].T * inv_scale).astype(jnp.float32)       # (Din, H), scale folded
    wv = params["wv"].T.astype(jnp.float32)                     # (Din, H)
    bq = params["bq"].reshape(1, -1).astype(jnp.float32)        # (1, H)
    bk = (params["bk"] * inv_scale).reshape(1, -1).astype(jnp.float32)
    bv = params["bv"].reshape(1, -1).astype(jnp.float32)
    return wq, wk, wv, bq, bk, bv


@partial(jax.jit, static_argnames=("dropout_p",))
def sdpa_model(query, key, value, wq, wk, wv, bq, bk, bv, *, dropout_p):
    """query/key/value: (B, S, Din) f32. Returns (B, S, H) f32."""
    B, S, Din = query.shape
    H = wq.shape[-1]

    # torch dropout with p >= 1 zeroes everything: skip all kernel work (memset).
    if dropout_p >= 1.0:
        return jnp.zeros((B, S, H), jnp.float32)

    keep_scale = 1.0 / (1.0 - dropout_p) if dropout_p > 0.0 else 1.0

    # Process Bt batches per grid step to amortize per-step overhead (Bt divides B).
    Bt = min(B, 8)
    while B % Bt:
        Bt -= 1

    kernel = partial(_attn_kernel, keep_scale=keep_scale)

    out = pl.pallas_call(
        kernel,
        out_shape=jax.ShapeDtypeStruct((B, S, H), jnp.float32),
        grid=(B // Bt,),
        in_specs=[
            pl.BlockSpec((Bt, S, Din), lambda b: (b, 0, 0)),   # query tile
            pl.BlockSpec((Bt, S, Din), lambda b: (b, 0, 0)),   # key tile
            pl.BlockSpec((Bt, S, Din), lambda b: (b, 0, 0)),   # value tile
            pl.BlockSpec((Din, H), lambda b: (0, 0)),          # Wq^T
            pl.BlockSpec((Din, H), lambda b: (0, 0)),          # Wk^T / scale
            pl.BlockSpec((Din, H), lambda b: (0, 0)),          # Wv^T
            pl.BlockSpec((1, H), lambda b: (0, 0)),            # bq
            pl.BlockSpec((1, H), lambda b: (0, 0)),            # bk / scale
            pl.BlockSpec((1, H), lambda b: (0, 0)),            # bv
        ],
        out_specs=pl.BlockSpec((Bt, S, H), lambda b: (b, 0, 0)),
        compiler_params=pltpu.CompilerParams(
            dimension_semantics=("parallel",)),
    )(query, key, value, wq, wk, wv, bq, bk, bv)
    return out


def _init_params(rng):
    # Deterministic init mimicking nn.Linear(6, 10): U(-1/sqrt(6), 1/sqrt(6)).
    ks = jax.random.split(rng, 6)
    bound = 1.0 / jnp.sqrt(6.0)
    u = lambda k, shp: jax.random.uniform(k, shp, jnp.float32, -bound, bound)
    return {
        "wq": u(ks[0], (10, 6)), "bq": u(ks[1], (10,)),
        "wk": u(ks[2], (10, 6)), "bk": u(ks[3], (10,)),
        "wv": u(ks[4], (10, 6)), "bv": u(ks[5], (10,)),
    }


def _reference(query, key, value, dropout_p, scale_factor, params):
    q = query @ params["wq"].T + params["bq"]
    k = key @ params["wk"].T + params["bk"]
    v = value @ params["wv"].T + params["bv"]
    logits = jnp.einsum("bqh,bkh->bqk", q, k) / scale_factor
    probs = jax.nn.softmax(logits, axis=-1)
    if dropout_p >= 1.0:
        keep = 0.0
    elif dropout_p > 0.0:
        keep = 1.0 / (1.0 - dropout_p)
    else:
        keep = 1.0
    return jnp.einsum("bqk,bkh->bqh", probs * keep, v)


if __name__ == "__main__":
    root = jax.random.PRNGKey(0)
    kp, kq, kk, kv = jax.random.split(root, 4)

    params = _init_params(kp)
    query = jax.random.normal(kq, (1, 5, 6), jnp.float32)
    key = jax.random.normal(kk, (1, 5, 6), jnp.float32)
    value = jax.random.normal(kv, (1, 5, 6), jnp.float32)
    dropout_p = 1.0          # as in the PyTorch spec
    scale_factor = 0.0001    # as in the PyTorch spec

    wq, wk, wv, bq, bk, bv = fuse_params(params, scale_factor)

    # Kernel-path check (dropout_p=0 exercises projections + softmax + attention).
    out_attn = sdpa_model(query, key, value, wq, wk, wv, bq, bk, bv, dropout_p=0.0)
    jax.block_until_ready(out_attn)
    ref_attn = _reference(query, key, value, 0.0, scale_factor, params)
    assert out_attn.shape == (1, 5, 10)
    assert jnp.allclose(out_attn, ref_attn, atol=3e-3), "mismatch vs reference (p=0)"

    # Spec configuration (dropout_p = 1 -> deterministic zeros, trace-time short-circuit).
    out = sdpa_model(query, key, value, wq, wk, wv, bq, bk, bv, dropout_p=dropout_p)
    jax.block_until_ready(out)
    ref = _reference(query, key, value, dropout_p, scale_factor, params)
    assert out.shape == (1, 5, 10)
    assert jnp.allclose(out, ref, atol=1e-6), "mismatch vs reference (p=1)"

    print("KERNEL_OK")
</pallas_src>

<mosaic_0001>
module attributes {stable_mosaic.version = 11 : i64} {
  func.func @_attn_kernel(%arg0: i32, %arg1: memref<1x5x6xf32, #tpu.memory_space<vmem>>, %arg2: memref<1x5x6xf32, #tpu.memory_space<vmem>>, %arg3: memref<1x5x6xf32, #tpu.memory_space<vmem>>, %arg4: memref<6x10xf32, #tpu.memory_space<vmem>>, %arg5: memref<6x10xf32, #tpu.memory_space<vmem>>, %arg6: memref<6x10xf32, #tpu.memory_space<vmem>>, %arg7: memref<1x10xf32, #tpu.memory_space<vmem>>, %arg8: memref<1x10xf32, #tpu.memory_space<vmem>>, %arg9: memref<1x10xf32, #tpu.memory_space<vmem>>, %arg10: memref<1x5x10xf32, #tpu.memory_space<vmem>>) attributes {dimension_semantics = [#tpu.dimension_semantics<parallel>], iteration_bounds = array<i64: 1>, scalar_prefetch = 0 : i64, scratch_operands = 0 : i64, tpu.core_type = #tpu.core_type<tc>, window_params = [{transform_indices = @transform_0, window_bounds = array<i64: 1, 5, 6>}, {transform_indices = @transform_1, window_bounds = array<i64: 1, 5, 6>}, {transform_indices = @transform_2, window_bounds = array<i64: 1, 5, 6>}, {pipeline_mode = #tpu.pipeline_mode<synchronous>, transform_indices = @transform_3, window_bounds = array<i64: 6, 10>}, {pipeline_mode = #tpu.pipeline_mode<synchronous>, transform_indices = @transform_4, window_bounds = array<i64: 6, 10>}, {pipeline_mode = #tpu.pipeline_mode<synchronous>, transform_indices = @transform_5, window_bounds = array<i64: 6, 10>}, {pipeline_mode = #tpu.pipeline_mode<synchronous>, transform_indices = @transform_6, window_bounds = array<i64: 1, 10>}, {pipeline_mode = #tpu.pipeline_mode<synchronous>, transform_indices = @transform_7, window_bounds = array<i64: 1, 10>}, {pipeline_mode = #tpu.pipeline_mode<synchronous>, transform_indices = @transform_8, window_bounds = array<i64: 1, 10>}, {transform_indices = @transform_9, window_bounds = array<i64: 1, 5, 10>}]} {
    %c0 = arith.constant 0 : index
    %c0_0 = arith.constant 0 : index
    %0 = vector.load %arg4[%c0, %c0_0] : memref<6x10xf32, #tpu.memory_space<vmem>>, vector<6x10xf32>
    %1 = vector.shape_cast %0 : vector<6x10xf32> to vector<1x6x10xf32>
    %c0_1 = arith.constant 0 : index
    %c0_2 = arith.constant 0 : index
    %2 = vector.load %arg5[%c0_1, %c0_2] : memref<6x10xf32, #tpu.memory_space<vmem>>, vector<6x10xf32>
    %3 = vector.shape_cast %2 : vector<6x10xf32> to vector<1x6x10xf32>
    %c0_3 = arith.constant 0 : index
    %c0_4 = arith.constant 0 : index
    %4 = vector.load %arg6[%c0_3, %c0_4] : memref<6x10xf32, #tpu.memory_space<vmem>>, vector<6x10xf32>
    %5 = vector.shape_cast %4 : vector<6x10xf32> to vector<1x6x10xf32>
    %c0_5 = arith.constant 0 : index
    %c0_6 = arith.constant 0 : index
    %c0_7 = arith.constant 0 : index
    %6 = vector.load %arg1[%c0_5, %c0_6, %c0_7] : memref<1x5x6xf32, #tpu.memory_space<vmem>>, vector<1x5x6xf32>
    "tpu.trace_start"() <{level = 10 : i32, message = "bsd,bdh->bsh"}> : () -> ()
    %cst = arith.constant dense<0.000000e+00> : vector<1x5x10xf32>
    %7 = tpu.matmul %6, %1, %cst {dimension_numbers = #tpu.dot_dimension_numbers<[2], [1], [1], [2], [0, 0, 0, 1, 1, 2], [0], [0]>} : vector<1x5x6xf32>, vector<1x6x10xf32>, vector<1x5x10xf32> -> vector<1x5x10xf32>
    "tpu.trace_stop"() : () -> ()
    %c0_8 = arith.constant 0 : index
    %c0_9 = arith.constant 0 : index
    %8 = vector.load %arg7[%c0_8, %c0_9] : memref<1x10xf32, #tpu.memory_space<vmem>>, vector<1x10xf32>
    %9 = vector.shape_cast %8 : vector<1x10xf32> to vector<1x1x10xf32>
    %10 = vector.broadcast %9 : vector<1x1x10xf32> to vector<1x5x10xf32>
    %11 = arith.addf %7, %10 : vector<1x5x10xf32>
    %c0_10 = arith.constant 0 : index
    %c0_11 = arith.constant 0 : index
    %c0_12 = arith.constant 0 : index
    %12 = vector.load %arg2[%c0_10, %c0_11, %c0_12] : memref<1x5x6xf32, #tpu.memory_space<vmem>>, vector<1x5x6xf32>
    "tpu.trace_start"() <{level = 10 : i32, message = "bsd,bdh->bsh"}> : () -> ()
    %cst_13 = arith.constant dense<0.000000e+00> : vector<1x5x10xf32>
    %13 = tpu.matmul %12, %3, %cst_13 {dimension_numbers = #tpu.dot_dimension_numbers<[2], [1], [1], [2], [0, 0, 0, 1, 1, 2], [0], [0]>} : vector<1x5x6xf32>, vector<1x6x10xf32>, vector<1x5x10xf32> -> vector<1x5x10xf32>
    "tpu.trace_stop"() : () -> ()
    %c0_14 = arith.constant 0 : index
    %c0_15 = arith.constant 0 : index
    %14 = vector.load %arg8[%c0_14, %c0_15] : memref<1x10xf32, #tpu.memory_space<vmem>>, vector<1x10xf32>
    %15 = vector.shape_cast %14 : vector<1x10xf32> to vector<1x1x10xf32>
    %16 = vector.broadcast %15 : vector<1x1x10xf32> to vector<1x5x10xf32>
    %17 = arith.addf %13, %16 : vector<1x5x10xf32>
    %c0_16 = arith.constant 0 : index
    %c0_17 = arith.constant 0 : index
    %c0_18 = arith.constant 0 : index
    %18 = vector.load %arg3[%c0_16, %c0_17, %c0_18] : memref<1x5x6xf32, #tpu.memory_space<vmem>>, vector<1x5x6xf32>
    "tpu.trace_start"() <{level = 10 : i32, message = "bsd,bdh->bsh"}> : () -> ()
    %cst_19 = arith.constant dense<0.000000e+00> : vector<1x5x10xf32>
    %19 = tpu.matmul %18, %5, %cst_19 {dimension_numbers = #tpu.dot_dimension_numbers<[2], [1], [1], [2], [0, 0, 0, 1, 1, 2], [0], [0]>} : vector<1x5x6xf32>, vector<1x6x10xf32>, vector<1x5x10xf32> -> vector<1x5x10xf32>
    "tpu.trace_stop"() : () -> ()
    %c0_20 = arith.constant 0 : index
    %c0_21 = arith.constant 0 : index
    %20 = vector.load %arg9[%c0_20, %c0_21] : memref<1x10xf32, #tpu.memory_space<vmem>>, vector<1x10xf32>
    %21 = vector.shape_cast %20 : vector<1x10xf32> to vector<1x1x10xf32>
    %22 = vector.broadcast %21 : vector<1x1x10xf32> to vector<1x5x10xf32>
    %23 = arith.addf %19, %22 : vector<1x5x10xf32>
    "tpu.trace_start"() <{level = 10 : i32, message = "bqh,bkh->bqk"}> : () -> ()
    %cst_22 = arith.constant dense<0.000000e+00> : vector<1x5x5xf32>
    %24 = tpu.matmul %11, %17, %cst_22 {dimension_numbers = #tpu.dot_dimension_numbers<[2], [2], [1], [1], [0, 0, 0, 1, 1, 1], [0], [0]>} : vector<1x5x10xf32>, vector<1x5x10xf32>, vector<1x5x5xf32> -> vector<1x5x5xf32>
    "tpu.trace_stop"() : () -> ()
    %cst_23 = arith.constant dense<0xFF800000> : vector<1x5xf32>
    %25 = vector.multi_reduction <maximumf>, %24, %cst_23 [2] : vector<1x5x5xf32> to vector<1x5xf32>
    %26 = vector.shape_cast %25 : vector<1x5xf32> to vector<1x5x1xf32>
    %27 = vector.broadcast %26 : vector<1x5x1xf32> to vector<1x5x5xf32>
    %28 = arith.subf %24, %27 : vector<1x5x5xf32>
    %29 = math.exp %28 : vector<1x5x5xf32>
    %cst_24 = arith.constant dense<0.000000e+00> : vector<1x5xf32>
    %30 = vector.multi_reduction <add>, %29, %cst_24 [2] : vector<1x5x5xf32> to vector<1x5xf32>
    %31 = vector.shape_cast %30 : vector<1x5xf32> to vector<1x5x1xf32>
    %32 = tpu.reciprocal %31 {approx = true} : vector<1x5x1xf32> -> vector<1x5x1xf32>
    %33 = vector.broadcast %32 : vector<1x5x1xf32> to vector<1x5x5xf32>
    %34 = arith.mulf %29, %33 : vector<1x5x5xf32>
    "tpu.trace_start"() <{level = 10 : i32, message = "bqk,bkh->bqh"}> : () -> ()
    %cst_25 = arith.constant dense<0.000000e+00> : vector<1x5x10xf32>
    %35 = tpu.matmul %34, %23, %cst_25 {dimension_numbers = #tpu.dot_dimension_numbers<[2], [1], [1], [2], [0, 0, 0, 1, 1, 2], [0], [0]>} : vector<1x5x5xf32>, vector<1x5x10xf32>, vector<1x5x10xf32> -> vector<1x5x10xf32>
    "tpu.trace_stop"() : () -> ()
    %c0_26 = arith.constant 0 : index
    %c0_27 = arith.constant 0 : index
    %c0_28 = arith.constant 0 : index
    %36 = vector.load %arg10[%c0_26, %c0_27, %c0_28] : memref<1x5x10xf32, #tpu.memory_space<vmem>>, vector<1x5x10xf32>
    tpu.vector_store %arg10[%c0_26, %c0_27, %c0_28], %35 {strides = array<i32>} : memref<1x5x10xf32, #tpu.memory_space<vmem>>, vector<1x5x10xf32>,
    return
  }
  func.func @transform_0(%arg0: i32) -> (i32, i32, i32) {
    %c0_i32 = arith.constant 0 : i32
    %c0_i32_0 = arith.constant 0 : i32
    %c0_i32_1 = arith.constant 0 : i32
    return %arg0, %c0_i32, %c0_i32_0 : i32, i32, i32
  }
  func.func @transform_1(%arg0: i32) -> (i32, i32, i32) {
    %c0_i32 = arith.constant 0 : i32
    %c0_i32_0 = arith.constant 0 : i32
    %c0_i32_1 = arith.constant 0 : i32
    return %arg0, %c0_i32, %c0_i32_0 : i32, i32, i32
  }
  func.func @transform_2(%arg0: i32) -> (i32, i32, i32) {
    %c0_i32 = arith.constant 0 : i32
    %c0_i32_0 = arith.constant 0 : i32
    %c0_i32_1 = arith.constant 0 : i32
    return %arg0, %c0_i32, %c0_i32_0 : i32, i32, i32
  }
  func.func @transform_3(%arg0: i32) -> (i32, i32) {
    %c0_i32 = arith.constant 0 : i32
    %c0_i32_0 = arith.constant 0 : i32
    %c0_i32_1 = arith.constant 0 : i32
    return %c0_i32, %c0_i32_0 : i32, i32
  }
  func.func @transform_4(%arg0: i32) -> (i32, i32) {
    %c0_i32 = arith.constant 0 : i32
    %c0_i32_0 = arith.constant 0 : i32
    %c0_i32_1 = arith.constant 0 : i32
    return %c0_i32, %c0_i32_0 : i32, i32
  }
  func.func @transform_5(%arg0: i32) -> (i32, i32) {
    %c0_i32 = arith.constant 0 : i32
    %c0_i32_0 = arith.constant 0 : i32
    %c0_i32_1 = arith.constant 0 : i32
    return %c0_i32, %c0_i32_0 : i32, i32
  }
  func.func @transform_6(%arg0: i32) -> (i32, i32) {
    %c0_i32 = arith.constant 0 : i32
    %c0_i32_0 = arith.constant 0 : i32
    %c0_i32_1 = arith.constant 0 : i32
    return %c0_i32, %c0_i32_0 : i32, i32
  }
  func.func @transform_7(%arg0: i32) -> (i32, i32) {
    %c0_i32 = arith.constant 0 : i32
    %c0_i32_0 = arith.constant 0 : i32
    %c0_i32_1 = arith.constant 0 : i32
    return %c0_i32, %c0_i32_0 : i32, i32
  }
  func.func @transform_8(%arg0: i32) -> (i32, i32) {
    %c0_i32 = arith.constant 0 : i32
    %c0_i32_0 = arith.constant 0 : i32
    %c0_i32_1 = arith.constant 0 : i32
    return %c0_i32, %c0_i32_0 : i32, i32
  }
  func.func @transform_9(%arg0: i32) -> (i32, i32, i32) {
    %c0_i32 = arith.constant 0 : i32
    %c0_i32_0 = arith.constant 0 : i32
    %c0_i32_1 = arith.constant 0 : i32
    return %arg0, %c0_i32, %c0_i32_0 : i32, i32, i32
  }
}

</mosaic_0001>

<bundles_post_ra>
// kernel: sdpa_model.1
= control target key start
LH: loop header
LB: loop body
LE: loop exit
PB: predicated region body
PF: predicated region fallthrough
CT: control target
= control target key end

     0   :  { %vm47_vm0 = vcmask 1045504   ;;  %vm43_vm1 = vcmask 48128   ;;  %v516_v0 = vmov 0.0   ;;  %vm517_vm2 = vmmov 0   ;;  %s609_s4 = inlined_call_operand.vmem [shape: f32[6,10], index: 4, kind: input, shape index: {}]   ;;  %s610_s1 = inlined_call_operand.vmem [shape: f32[1,5,6], index: 1, kind: input, shape index: {}]   ;;  %s611_s3 = inlined_call_operand.vmem [shape: f32[6,10], index: 3, kind: input, shape index: {}]   ;;  %s612_s0 = inlined_call_operand.vmem [shape: f32[1,5,6], index: 0, kind: input, shape index: {}]   ;;  %s613_s7 = inlined_call_operand.vmem [shape: f32[1,10], index: 7, kind: input, shape index: {}]   ;;  %s614_s6 = inlined_call_operand.vmem [shape: f32[1,10], index: 6, kind: input, shape index: {}]   ;;  %s615_s5 = inlined_call_operand.vmem [shape: f32[6,10], index: 5, kind: input, shape index: {}]   ;;  %s616_s2 = inlined_call_operand.vmem [shape: f32[1,5,6], index: 2, kind: input, shape index: {}]   ;;  %s617_s8 = inlined_call_operand.vmem [shape: f32[1,10], index: 8, kind: input, shape index: {}]   ;;  %s618_s9 = inlined_call_operand.vmem [shape: f32[1,5,10], index: 9, kind: output, shape index: {}]  }
   0x1   :  { %490 = vmatprep.subr.mxu1 %v516_v0  ;;  %v33_v1 = vld [vmem:[%s609_s4] sm:$0x3f]  ;;  %492 = vmatprep.mubr.msk.f32.mxu1 %vm517_vm2, %v516_v0  ;;  %vm289_vm3 = vcmask 80896   ;;  %vm366_vm4 = vcmask 36864   ;;  %vm382_vm5 = vcmask 1044480   ;;  %vm378_vm6 = vcmask 39936  }
   0x2   :  { %v121_v2 = vld [vmem:[%s610_s1] sm:$0x1f]  ;;  %491 = vmatpush3.msk.msra.mxu1 %vm47_vm0, %v33_v1  ;;  %485 = vmatprep.subr.mxu0 %v516_v0  ;;  %vm456_vm7 = vcmask 77824  }
   0x3   :  { %v32_v3 = vld [vmem:[%s611_s3] sm:$0x3f]  ;;  %493 = vmatmul.mubr.msk.f32.vlgmr.msra.gmra.mxu1 %vm43_vm1, %v121_v2  ;;  %487 = vmatprep.mubr.msk.f32.mxu0 %vm517_vm2, %v516_v0 }
   0x4   :  { %v35_v4 = vld [vmem:[%s612_s0] sm:$0x1f]  ;;  %486 = vmatpush3.msk.msra.mxu0 %vm47_vm0, %v32_v3  ;;  %500 = vmatprep.subr.mxu1 %v516_v0 }
   0x5   :  { %488 = vmatmul.mubr.msk.f32.vlgmr.msra.gmra.mxu0 %vm43_vm1, %v35_v4  ;;  %502 = vmatprep.mubr.msk.f32.mxu1 %vm517_vm2, %v516_v0  ;;  %v465_v5 = vld [vmem:[%s613_s7] ss:$0 sm:$0xff] }
   0x6   :  { %495 = vmatprep.subr.mxu0 %v516_v0  ;;  %497 = vmatprep.mubr.msk.f32.mxu0 %vm517_vm2, %v516_v0  ;;  %v462_v7 = vld [vmem:[%s614_s6] ss:$0 sm:$0xff] }
   0x7   :  { %v34_v13 = vld [vmem:[%s615_s5] sm:$0x3f] }
   0x8   :  { %v205_v14 = vld [vmem:[%s616_s2] sm:$0x1f]  ;;  %496 = vmatpush3.msk.msra.mxu0 %vm47_vm0, %v34_v13 }
   0x9   :  { %498 = vmatmul.mubr.msk.f32.vlgmr.msra.gmra.mxu0 %vm43_vm1, %v205_v14  ;;  %505 = vmatprep.subr.mxu0 %v516_v0  ;;  %v468_v24 = vld [vmem:[%s617_s8] ss:$0 sm:$0xff] }
   0xa   :  { %507 = vmatprep.mubr.msk.f32.mxu0 %vm517_vm2, %v516_v0 }
  0xc3   :  { %v201_v6 = vpop.f32.mrf.mxu1 }
  0xc4   :  { %v202_v8 = vadd.f32 %v465_v5, %v201_v6 }
  0xc5   :  { %v117_v9 = vpop.f32.mrf.mxu0  ;;  %v494_v10 = vpop.f32.mrf.mxu1 }
  0xc6   :  { %v118_v11 = vadd.f32 %v462_v7, %v117_v9  ;;  %501 = vmatpush3.xpose.msk.msra.mxu1 %vm289_vm3, %v202_v8 }
  0xc7   :  { %v489_v12 = vpop.f32.mrf.mxu0 }
  0xc9   :  { %503 = vmatmul.mubr.msk.f32.vlgmr.msra.gmra.mxu1 %vm289_vm3, %v118_v11  ;;  %v285_v23 = vpop.f32.mrf.mxu0 }
  0xca   :  { %v286_v25 = vadd.f32 %v468_v24, %v285_v23 }
  0xcb   :  { %v499_v26 = vpop.f32.mrf.mxu0 }
  0xcc   :  { %506 = vmatpush3.msk.msra.mxu0 %vm382_vm5, %v286_v25 }
 0x189   :  { %v362_v15 = vpop.f32.mrf.mxu1 }
 0x18a   :  { %v367_v16 = vsel %vm366_vm4, %v362_v15, -inf }
 0x18b   :  { %368 = vmax.xlane.f32.xlu0 %v367_v16  ;;  %v504_v17 = vpop.f32.mrf.mxu1 }
 0x214   :  { %v369_v18 = vpop.xlane.xlu0 %368 }
 0x215   :  { %v370_v19 = vsub.f32 %v362_v15, %v369_v18 }
 0x217   :  { %v371_v20 = vmul.f32 1.442695, %v370_v19 }
 0x219   :  { %512 = vpow2.f32 %v371_v20 }
 0x226   :  { %v513_v21 = vpop.eup %512 }
 0x227   :  { %v373_v22 = vsel %vm366_vm4, %v513_v21, 0.0 }
 0x228   :  { %374 = vadd.xlane.f32.xlu0 %v373_v22 }
 0x2b1   :  { %v375_v27 = vpop.xlane.xlu0 %374 }
 0x2b2   :  { %514 = vrcp.f32 %v375_v27 }
 0x2bf   :  { %v515_v28 = vpop.eup %514 }
 0x2c0   :  { %v377_v29 = vmul.f32 %v515_v28, %v513_v21 }
 0x2c2   :  { %508 = vmatmul.mubr.msk.f32.vlgmr.msra.gmra.mxu0 %vm378_vm6, %v377_v29 }
 0x382   :  { %v452_v30 = vpop.f32.mrf.mxu0 }
 0x383   :  { %457 = vst.msk [vmem:[%s618_s9] sm:$0x1f] %vm456_vm7, %v452_v30 }
 0x384   :  { %v509_v31 = vpop.f32.mrf.mxu0 }

</bundles_post_ra>
